<compile_context>
chip_gen: v5e
topology: v5e:2x2
jax: 0.10.0
libtpu: 0.0.40
codegen_flags: <defaults>
</compile_context>

<pallas_src>
import jax
import jax.numpy as jnp
from jax.experimental import pallas as pl
from jax.experimental.pallas import tpu as pltpu

_OUT_PAD = 128  # lane-dense padded width of the 3-wide output head


def _round_up(n, m):
    return (n + m - 1) // m * m


def _mlp_kernel(x_ref, w1_ref, b1_ref, w2_ref, b2_ref, w3_ref, b3_ref, o_ref):
    """One batch tile: relu(x@W1+b1) -> relu(.@W2+b2) -> tanh(.@W3+b3).

    Matmul inputs are bf16 (MXU native); accumulation and every elementwise op
    (bias add, ReLU, tanh) run in f32.
    """
    h = jnp.dot(x_ref[...], w1_ref[...], preferred_element_type=jnp.float32)
    h = jnp.maximum(h + b1_ref[...], 0.0)
    h = jnp.dot(h.astype(w2_ref.dtype), w2_ref[...],
                preferred_element_type=jnp.float32)
    h = jnp.maximum(h + b2_ref[...], 0.0)
    h = jnp.dot(h.astype(w3_ref.dtype), w3_ref[...],
                preferred_element_type=jnp.float32)
    o_ref[...] = jnp.tanh(h + b3_ref[...]).astype(o_ref.dtype)


def mlp_forward(x, params, *, block_batch=512):
    """Run the fused MLP Pallas kernel.

    x: [batch, ...] -- flattened from start_dim=1 (glue, plain JAX).
    params: (w1, b1, w2, b2, w3, b3) with wi: [in, out] (f32), bi: [1, out] (f32).
    Returns f32 [batch, 3].
    """
    batch = x.shape[0]
    x2d = x.reshape(batch, -1)
    in_features = x2d.shape[1]
    w1, b1, w2, b2, w3, b3 = params
    h1 = w1.shape[1]
    h2 = w2.shape[1]
    out_dim = w3.shape[1]  # 3

    # --- Lane-dense output head: zero-pad 3 -> 128 columns (free MXU lanes). ---
    w3p = jnp.zeros((w3.shape[0], _OUT_PAD), jnp.float32).at[:, :out_dim].set(w3)
    b3p = jnp.zeros((1, _OUT_PAD), jnp.float32).at[:, :out_dim].set(b3)

    # --- bf16 matmul inputs, f32 biases / accumulation / activations. ---
    x_bf = x2d.astype(jnp.bfloat16)
    w1_bf = w1.astype(jnp.bfloat16)
    w2_bf = w2.astype(jnp.bfloat16)
    w3_bf = w3p.astype(jnp.bfloat16)
    b1_f = b1.astype(jnp.float32)
    b2_f = b2.astype(jnp.float32)
    b3_f = b3p.astype(jnp.float32)

    # --- Batch tiling: tile rows by tb (multiple of 8 sublanes), pad batch. ---
    tb = min(block_batch, _round_up(batch, 8))
    tb = _round_up(tb, 8)
    batch_p = _round_up(batch, tb)
    if batch_p != batch:
        x_bf = jnp.pad(x_bf, ((0, batch_p - batch), (0, 0)))
    grid = (batch_p // tb,)

    # Per-tile VMEM footprint (double-buffered x/out tiles + resident weights).
    # Sized so the default choice also fits v7x's 32 MiB scoped / 64 MiB VMEM.
    vmem_limit = 32 * 1024 * 1024

    flops = 2 * batch_p * (in_features * h1 + h1 * h2 + h2 * _OUT_PAD)
    bytes_accessed = (
        x_bf.size * 2
        + (w1_bf.size + w2_bf.size + w3_bf.size) * 2
        + (b1_f.size + b2_f.size + b3_f.size) * 4
        + batch_p * _OUT_PAD * 4
    )
    cost = pl.CostEstimate(
        flops=flops,
        transcendentals=batch_p * _OUT_PAD,  # tanh on the padded head
        bytes_accessed=bytes_accessed,
    )

    out_padded = pl.pallas_call(
        _mlp_kernel,
        out_shape=jax.ShapeDtypeStruct((batch_p, _OUT_PAD), jnp.float32),
        grid_spec=pltpu.PrefetchScalarGridSpec(
            num_scalar_prefetch=0,
            grid=grid,
            in_specs=[
                pl.BlockSpec((tb, in_features), lambda i: (i, 0)),  # x tile
                pl.BlockSpec((in_features, h1), lambda i: (0, 0)),  # W1 resident
                pl.BlockSpec((1, h1), lambda i: (0, 0)),            # b1 resident
                pl.BlockSpec((h1, h2), lambda i: (0, 0)),           # W2 resident
                pl.BlockSpec((1, h2), lambda i: (0, 0)),            # b2 resident
                pl.BlockSpec((h2, _OUT_PAD), lambda i: (0, 0)),     # W3 resident
                pl.BlockSpec((1, _OUT_PAD), lambda i: (0, 0)),      # b3 resident
            ],
            out_specs=pl.BlockSpec((tb, _OUT_PAD), lambda i: (i, 0)),
        ),
        compiler_params=pltpu.CompilerParams(
            dimension_semantics=("parallel",),  # shard batch tiles across TCs
            vmem_limit_bytes=vmem_limit,
        ),
        cost_estimate=cost,
    )(x_bf, w1_bf, b1_f, w2_bf, b2_f, w3_bf, b3_f)

    # Drop batch padding and the lane padding of the 3-wide head.
    return out_padded[:batch, :out_dim]


def init_params(key, input_size, hidden_sizes):
    """Deterministic init mimicking nn.Linear's U(-1/sqrt(fan_in), 1/sqrt(fan_in))."""
    sizes = [input_size] + list(hidden_sizes) + [3]
    params = []
    for i in range(len(sizes) - 1):
        fan_in, fan_out = sizes[i], sizes[i + 1]
        key, kw, kb = jax.random.split(key, 3)
        bound = 1.0 / jnp.sqrt(jnp.float32(fan_in))
        w = jax.random.uniform(kw, (fan_in, fan_out), jnp.float32, -bound, bound)
        b = jax.random.uniform(kb, (1, fan_out), jnp.float32, -bound, bound)
        params.extend([w, b])
    return tuple(params)


def reference_forward_f32(x, params):
    """Pure-f32 JAX reference of the module's forward pass."""
    w1, b1, w2, b2, w3, b3 = params
    h = x.reshape(x.shape[0], -1).astype(jnp.float32)
    h = jnp.maximum(h @ w1 + b1, 0.0)
    h = jnp.maximum(h @ w2 + b2, 0.0)
    return jnp.tanh(h @ w3 + b3)


def reference_forward_bf16(x, params):
    """Reference with the same bf16-in / f32-accumulate matmul policy as the kernel."""
    w1, b1, w2, b2, w3, b3 = params
    h = x.reshape(x.shape[0], -1)

    def mm(a, w):
        return jnp.dot(a.astype(jnp.bfloat16), w.astype(jnp.bfloat16),
                       preferred_element_type=jnp.float32)

    h = jnp.maximum(mm(h, w1) + b1, 0.0)
    h = jnp.maximum(mm(h, w2) + b2, 0.0)
    return jnp.tanh(mm(h, w3) + b3)


if __name__ == "__main__":
    # Shapes consistent with the module: dwi input [batch=8, channels=4, seq=16]
    # -> flattened input_size = 64, hidden_sizes = [32, 32], ReLU, dropout = 0
    # (eval semantics).
    batch, c, s = 8, 4, 16
    input_size = c * s
    hidden_sizes = [32, 32]

    key = jax.random.PRNGKey(0)
    key, kx = jax.random.split(key)
    x = jax.random.normal(kx, (batch, c, s), dtype=jnp.float32)

    params = init_params(key, input_size, hidden_sizes)

    out = mlp_forward(x, params)
    out = jax.block_until_ready(out)
    assert out.shape == (batch, 3), out.shape

    # Tight check vs. a reference using the same bf16-matmul / f32-accumulate policy.
    ref_bf16 = reference_forward_bf16(x, params)
    assert jnp.allclose(out, ref_bf16, atol=1e-4, rtol=1e-4), "mismatch vs bf16 reference"

    # Loose check vs. the pure-f32 PyTorch-equivalent reference (bf16 input rounding).
    ref_f32 = reference_forward_f32(x, params)
    assert jnp.allclose(out, ref_f32, atol=3e-2, rtol=3e-2), "mismatch vs f32 reference"

    # TODO(synk): nn.Dropout (dropout>0 during training) is not implemented; the
    # module's default/eval path (dropout=0) is what this kernel reproduces.
    print("KERNEL_OK")
</pallas_src>

<mosaic_0001>
module attributes {stable_mosaic.version = 11 : i64} {
  func.func @_mlp_kernel(%arg0: i32, %arg1: memref<8x64xbf16, #tpu.memory_space<vmem>>, %arg2: memref<64x32xbf16, #tpu.memory_space<vmem>>, %arg3: memref<1x32xf32, #tpu.memory_space<vmem>>, %arg4: memref<32x32xbf16, #tpu.memory_space<vmem>>, %arg5: memref<1x32xf32, #tpu.memory_space<vmem>>, %arg6: memref<32x128xbf16, #tpu.memory_space<vmem>>, %arg7: memref<1x128xf32, #tpu.memory_space<vmem>>, %arg8: memref<8x128xf32, #tpu.memory_space<vmem>>) attributes {dimension_semantics = [#tpu.dimension_semantics<parallel>], iteration_bounds = array<i64: 1>, scalar_prefetch = 0 : i64, scratch_operands = 0 : i64, tpu.core_type = #tpu.core_type<tc>, window_params = [{transform_indices = @transform_0, window_bounds = array<i64: 8, 64>}, {pipeline_mode = #tpu.pipeline_mode<synchronous>, transform_indices = @transform_1, window_bounds = array<i64: 64, 32>}, {pipeline_mode = #tpu.pipeline_mode<synchronous>, transform_indices = @transform_2, window_bounds = array<i64: 1, 32>}, {pipeline_mode = #tpu.pipeline_mode<synchronous>, transform_indices = @transform_3, window_bounds = array<i64: 32, 32>}, {pipeline_mode = #tpu.pipeline_mode<synchronous>, transform_indices = @transform_4, window_bounds = array<i64: 1, 32>}, {pipeline_mode = #tpu.pipeline_mode<synchronous>, transform_indices = @transform_5, window_bounds = array<i64: 32, 128>}, {pipeline_mode = #tpu.pipeline_mode<synchronous>, transform_indices = @transform_6, window_bounds = array<i64: 1, 128>}, {transform_indices = @transform_7, window_bounds = array<i64: 8, 128>}]} {
    %c0 = arith.constant 0 : index
    %c0_0 = arith.constant 0 : index
    %0 = vector.load %arg1[%c0, %c0_0] : memref<8x64xbf16, #tpu.memory_space<vmem>>, vector<8x64xbf16>
    %c0_1 = arith.constant 0 : index
    %c0_2 = arith.constant 0 : index
    %1 = vector.load %arg2[%c0_1, %c0_2] : memref<64x32xbf16, #tpu.memory_space<vmem>>, vector<64x32xbf16>
    %cst = arith.constant dense<0.000000e+00> : vector<8x32xf32>
    %2 = tpu.matmul %0, %1, %cst {dimension_numbers = #tpu.dot_dimension_numbers<[1], [0], [0], [1], [0, 0, 1, 1], [], []>} : vector<8x64xbf16>, vector<64x32xbf16>, vector<8x32xf32> -> vector<8x32xf32>
    %c0_3 = arith.constant 0 : index
    %c0_4 = arith.constant 0 : index
    %3 = vector.load %arg3[%c0_3, %c0_4] : memref<1x32xf32, #tpu.memory_space<vmem>>, vector<1x32xf32>
    %4 = vector.broadcast %3 : vector<1x32xf32> to vector<8x32xf32>
    %5 = arith.addf %2, %4 : vector<8x32xf32>
    %cst_5 = arith.constant 0.000000e+00 : f32
    %6 = vector.broadcast %cst_5 : f32 to vector<8x32xf32>
    %7 = arith.maximumf %5, %6 : vector<8x32xf32>
    %8 = arith.truncf %7 : vector<8x32xf32> to vector<8x32xbf16>
    %c0_6 = arith.constant 0 : index
    %c0_7 = arith.constant 0 : index
    %9 = vector.load %arg4[%c0_6, %c0_7] : memref<32x32xbf16, #tpu.memory_space<vmem>>, vector<32x32xbf16>
    %cst_8 = arith.constant dense<0.000000e+00> : vector<8x32xf32>
    %10 = tpu.matmul %8, %9, %cst_8 {dimension_numbers = #tpu.dot_dimension_numbers<[1], [0], [0], [1], [0, 0, 1, 1], [], []>} : vector<8x32xbf16>, vector<32x32xbf16>, vector<8x32xf32> -> vector<8x32xf32>
    %c0_9 = arith.constant 0 : index
    %c0_10 = arith.constant 0 : index
    %11 = vector.load %arg5[%c0_9, %c0_10] : memref<1x32xf32, #tpu.memory_space<vmem>>, vector<1x32xf32>
    %12 = vector.broadcast %11 : vector<1x32xf32> to vector<8x32xf32>
    %13 = arith.addf %10, %12 : vector<8x32xf32>
    %cst_11 = arith.constant 0.000000e+00 : f32
    %14 = vector.broadcast %cst_11 : f32 to vector<8x32xf32>
    %15 = arith.maximumf %13, %14 : vector<8x32xf32>
    %16 = arith.truncf %15 : vector<8x32xf32> to vector<8x32xbf16>
    %c0_12 = arith.constant 0 : index
    %c0_13 = arith.constant 0 : index
    %17 = vector.load %arg6[%c0_12, %c0_13] : memref<32x128xbf16, #tpu.memory_space<vmem>>, vector<32x128xbf16>
    %cst_14 = arith.constant dense<0.000000e+00> : vector<8x128xf32>
    %18 = tpu.matmul %16, %17, %cst_14 {dimension_numbers = #tpu.dot_dimension_numbers<[1], [0], [0], [1], [0, 0, 1, 1], [], []>} : vector<8x32xbf16>, vector<32x128xbf16>, vector<8x128xf32> -> vector<8x128xf32>
    %c0_15 = arith.constant 0 : index
    %c0_16 = arith.constant 0 : index
    %19 = vector.load %arg7[%c0_15, %c0_16] : memref<1x128xf32, #tpu.memory_space<vmem>>, vector<1x128xf32>
    %20 = vector.broadcast %19 : vector<1x128xf32> to vector<8x128xf32>
    %21 = arith.addf %18, %20 : vector<8x128xf32>
    %22 = math.tanh %21 : vector<8x128xf32>
    %c0_17 = arith.constant 0 : index
    %c0_18 = arith.constant 0 : index
    %23 = vector.load %arg8[%c0_17, %c0_18] : memref<8x128xf32, #tpu.memory_space<vmem>>, vector<8x128xf32>
    tpu.vector_store %arg8[%c0_17, %c0_18], %22 {strides = array<i32>} : memref<8x128xf32, #tpu.memory_space<vmem>>, vector<8x128xf32>,
    return
  }
  func.func @transform_0(%arg0: i32) -> (i32, i32) {
    %c0_i32 = arith.constant 0 : i32
    %c0_i32_0 = arith.constant 0 : i32
    return %arg0, %c0_i32 : i32, i32
  }
  func.func @transform_1(%arg0: i32) -> (i32, i32) {
    %c0_i32 = arith.constant 0 : i32
    %c0_i32_0 = arith.constant 0 : i32
    %c0_i32_1 = arith.constant 0 : i32
    return %c0_i32, %c0_i32_0 : i32, i32
  }
  func.func @transform_2(%arg0: i32) -> (i32, i32) {
    %c0_i32 = arith.constant 0 : i32
    %c0_i32_0 = arith.constant 0 : i32
    %c0_i32_1 = arith.constant 0 : i32
    return %c0_i32, %c0_i32_0 : i32, i32
  }
  func.func @transform_3(%arg0: i32) -> (i32, i32) {
    %c0_i32 = arith.constant 0 : i32
    %c0_i32_0 = arith.constant 0 : i32
    %c0_i32_1 = arith.constant 0 : i32
    return %c0_i32, %c0_i32_0 : i32, i32
  }
  func.func @transform_4(%arg0: i32) -> (i32, i32) {
    %c0_i32 = arith.constant 0 : i32
    %c0_i32_0 = arith.constant 0 : i32
    %c0_i32_1 = arith.constant 0 : i32
    return %c0_i32, %c0_i32_0 : i32, i32
  }
  func.func @transform_5(%arg0: i32) -> (i32, i32) {
    %c0_i32 = arith.constant 0 : i32
    %c0_i32_0 = arith.constant 0 : i32
    %c0_i32_1 = arith.constant 0 : i32
    return %c0_i32, %c0_i32_0 : i32, i32
  }
  func.func @transform_6(%arg0: i32) -> (i32, i32) {
    %c0_i32 = arith.constant 0 : i32
    %c0_i32_0 = arith.constant 0 : i32
    %c0_i32_1 = arith.constant 0 : i32
    return %c0_i32, %c0_i32_0 : i32, i32
  }
  func.func @transform_7(%arg0: i32) -> (i32, i32) {
    %c0_i32 = arith.constant 0 : i32
    %c0_i32_0 = arith.constant 0 : i32
    return %arg0, %c0_i32 : i32, i32
  }
}

</mosaic_0001>

<bundles_post_ra>
// kernel: tpu_custom_call.1
= control target key start
LH: loop header
LB: loop body
LE: loop exit
PB: predicated region body
PF: predicated region fallthrough
CT: control target
= control target key end

     0   :  { %s332_s0 = inlined_call_operand.vmem [shape: bf16[8,64], index: 0, kind: input, shape index: {}]   ;;  %s333_s1 = inlined_call_operand.vmem [shape: bf16[64,32], index: 1, kind: input, shape index: {}]   ;;  %s334_s2 = inlined_call_operand.vmem [shape: f32[1,32], index: 2, kind: input, shape index: {}]   ;;  %s335_s3 = inlined_call_operand.vmem [shape: bf16[32,32], index: 3, kind: input, shape index: {}]   ;;  %s336_s4 = inlined_call_operand.vmem [shape: f32[1,32], index: 4, kind: input, shape index: {}]   ;;  %s337_s5 = inlined_call_operand.vmem [shape: bf16[32,128], index: 5, kind: input, shape index: {}]   ;;  %s338_s6 = inlined_call_operand.vmem [shape: f32[1,128], index: 6, kind: input, shape index: {}]   ;;  %s339_s7 = inlined_call_operand.hbm [shape: f32[8,128], index: 7, kind: output, shape index: {}]  }
   0x1   :  { %v215_v0 = vld [vmem:[%s333_s1 + $0x18] sm:$0xff]  ;;  %v214_v1 = vld [vmem:[%s333_s1 + $0x10] sm:$0xff] }
   0x2   :  { %73 = vmatpush.bf16.msra.mxu0 %v215_v0 }
   0x3   :  { %12 = vsyncpa [#allocation3], 0  ;;  %v213_v2 = vld [vmem:[%s333_s1 + $0x8] sm:$0xff]  ;;  %v212_v3 = vld [vmem:[%s333_s1] sm:$0xff]  ;;  %vm65_vm0 = vcmask 523264   ;;  %vm104_vm1 = vcmask 261120  }
   0x4   :  { %v28_v4 = vld [vmem:[%s332_s0] sm:$0xf]  ;;  %v217_v5 = vld [vmem:[%s335_s3 + $0x8] sm:$0xff]  ;;  %s252_s21 = smov [#allocation2]   ;;  %s168_s24 = sshll.u32 %s339_s7, 4  ;;  %s169_s24 = int_to_ptr.hbm [resolvable:$true] %s168_s24 }
   0x5   :  { %114 = vmatpush.bf16.msra.mxu1 %v217_v5  ;;  %v216_v6 = vld [vmem:[%s335_s3] sm:$0xff]  ;;  %v219_v13 = vld [vmem:[%s337_s5 + $0x8] sm:$0xff] }
   0x6   :  { %74 = vmatpush.bf16.msra.mxu0 %v214_v1  ;;  %v221_v7 = vld [vmem:[%s334_s2] ss:$0 sm:$0xff]  ;;  %152 = vmatpush.bf16.msra.mxu2 %v219_v13 }
   0x7   :  { %v218_v14 = vld [vmem:[%s337_s5] sm:$0xff]  ;;  %s166_s5 = sshll.u32 %s252_s21, 4  ;;  %s167_s5 = int_to_ptr.vmem [resolvable:$true] %s166_s5 }
   0x8   :  { %v222_v15 = vld [vmem:[%s336_s4] ss:$0 sm:$0xff] }
   0x9   :  { %115 = vmatpush.bf16.msra.mxu1 %v216_v6  ;;  %v223_v21 = vld [vmem:[%s338_s6] ss:$0 sm:$0xff] }
   0xa   :  { %75 = vmatpush.bf16.msra.mxu0 %v213_v2  ;;  %153 = vmatpush.bf16.msra.mxu2 %v218_v14 }
   0xe   :  { %76 = vmatpush.bf16.msra.mxu0 %v212_v3 }
  0x11   :  { %193 = vmatmul.msk.bf16.vlgmr.msra.gmra.mxu0 %vm65_vm0, %v28_v4 }
  0x8e   :  { %v78_v8 = vpop.f32.mrf.mxu0 }
  0x8f   :  { %v79_v9 = vadd.f32 %v221_v7, %v78_v8 }
  0x91   :  { %v82_v10 = vmax.f32 %v79_v9, 0.0 }
  0x93   :  { %v83_v11 = vpack.c.bf16 %v82_v10, %v82_v10 }
  0x95   :  { %202 = vmatmul.msk.bf16.vlgmr.msra.gmra.mxu1 %vm104_vm1, %v83_v11 }
  0x96   :  { %v80_v12 = vpop.f32.mrf.mxu0 }
 0x112   :  { %v117_v16 = vpop.f32.mrf.mxu1 }
 0x113   :  { %v118_v17 = vadd.f32 %v222_v15, %v117_v16 }
 0x115   :  { %v121_v18 = vmax.f32 %v118_v17, 0.0 }
 0x117   :  { %v122_v19 = vpack.c.bf16 %v121_v18, %v121_v18 }
 0x119   :  { %211 = vmatmul.msk.bf16.vlgmr.msra.gmra.mxu2 %vm104_vm1, %v122_v19 }
 0x11a   :  { %v119_v20 = vpop.f32.mrf.mxu1 }
 0x19c   :  { %v155_v22 = vpop.f32.mrf.mxu2 }
 0x19d   :  { %v156_v23 = vadd.f32 %v223_v21, %v155_v22 }
 0x19f   :  { %224 = vtanh.f32 %v156_v23 }
 0x1a4   :  { %v157_v24 = vpop.f32.mrf.mxu2 }
 0x1a5   :  { %v225_v25 = vpop.eup %224 }
 0x1a6   :  { %160 = vst [vmem:[#allocation2] sm:$0xff] %v225_v25 }
 0x1a7   :  { %171 = dma.vmem_to_hbm [thread:$0]  %s167_s5, 128, %s169_s24, [#allocation3]  }
 0x1a8   :  { %250 = dma.done.wait [#allocation3], 128  }
 0x1a9   :  { %251 = vsyncadd [#allocation3], 4294967168 }
 0x1aa   :  { %176 = vsyncpa [#allocation3], 1 }

</bundles_post_ra>
